<compile_context>
chip_gen: v7x
topology: tpu7x:2x2x1
jax: 0.10.0
libtpu: 0.0.40
codegen_flags: <defaults>
</compile_context>

<pallas_src>
import functools

import jax
import jax.numpy as jnp
from jax.experimental import pallas as pl
from jax.experimental.pallas import tpu as pltpu

_BN_EPS = 1e-5


def _pick_rows_tile(m, cap=512):
    """Largest divisor of m that is <= cap and sublane-aligned (mult of 8)."""
    for t in range(min(cap, m), 0, -1):
        if m % t == 0 and (t % 8 == 0 or t == m):
            return t
    return m


def _pick_row_strip(ho, wo, cap=512):
    """Output rows per strip for the fused BN2 kernel (strip*wo rows/block)."""
    for t in range(ho, 0, -1):
        if ho % t == 0 and t * wo <= cap and (t * wo) % 8 == 0:
            return t
    return ho  # full-height strip is always layout-legal


# --------------------------------------------------------------------------
# Kernel 1: fused 3x3 conv (stride 1 or 2, pad 1) + bias + per-image BN
#           sum/sumsq statistics.  One batch element per grid step.
# --------------------------------------------------------------------------
def _conv3x3_bn_stats_kernel(x_ref, w_ref, b_ref, o_ref, st_ref, xp_ref,
                             *, H, W, Ho, Wo, Cin, stride):
    f32 = jnp.float32
    # Zero-pad this image into the VMEM scratch (no HBM pad pass).  Borders
    # are rewritten every step so the grid axis stays parallel-safe.
    zr = jnp.zeros((1, W + 2, Cin), f32)
    xp_ref[0:1, :, :] = zr
    xp_ref[H + 1:H + 2, :, :] = zr
    zc = jnp.zeros((H + 2, 1, Cin), f32)
    xp_ref[:, 0:1, :] = zc
    xp_ref[:, W + 1:W + 2, :] = zc
    xp_ref[1:H + 1, 1:W + 1, :] = x_ref[0].astype(f32)

    # im2col: concatenate the 9 taps along the channel (lane) axis so the
    # whole conv is a single (Ho*Wo, 9*Cin) x (9*Cin, Cout) MXU matmul.
    patches = []
    if stride == 1:
        for kh in range(3):
            for kw in range(3):
                p = xp_ref[kh:kh + Ho, kw:kw + Wo, :]
                patches.append(p.reshape(Ho * Wo, Cin))
    else:
        # Stride 2: decimate columns once via strided (sublane) ref loads;
        # rows are decimated per tap with a cheap leading-dim reshape.
        xe = xp_ref[:, pl.ds(0, Wo + 1, stride=2), :]   # padded even columns
        xo = xp_ref[:, pl.ds(1, Wo + 1, stride=2), :]   # padded odd columns
        col_src = {0: (xe, 0), 1: (xo, 0), 2: (xe, 1)}
        for kh in range(3):
            for kw in range(3):
                src, c0 = col_src[kw]
                rows = src[kh:kh + 2 * Ho]                     # (2Ho, Wo+1, Cin)
                rows = rows.reshape(Ho, 2, Wo + 1, Cin)[:, 0]  # even rows
                patches.append(rows[:, c0:c0 + Wo, :].reshape(Ho * Wo, Cin))
    col = jnp.concatenate(patches, axis=-1)                    # (Ho*Wo, 9*Cin)
    out = jnp.dot(col, w_ref[...].astype(f32),
                  preferred_element_type=jnp.float32)
    out = out + b_ref[...].astype(f32)
    o_ref[0] = out.astype(o_ref.dtype)
    # Per-image partial BatchNorm statistics (summed over N by the consumer).
    st_ref[0] = jnp.concatenate(
        [jnp.sum(out, axis=0, keepdims=True),
         jnp.sum(out * out, axis=0, keepdims=True)], axis=0)


def conv3x3_bn_stats(x, w, b, *, stride):
    """x: (N,H,W,Cin) -> ((N, Ho*Wo, Cout) conv+bias, (N, 2, Cout) stats)."""
    N, H, W, Cin = x.shape
    Cout = w.shape[-1]
    Ho, Wo = (H // 2, W // 2) if stride == 2 else (H, W)
    kernel = functools.partial(_conv3x3_bn_stats_kernel, H=H, W=W, Ho=Ho,
                               Wo=Wo, Cin=Cin, stride=stride)
    return pl.pallas_call(
        kernel,
        out_shape=(jax.ShapeDtypeStruct((N, Ho * Wo, Cout), x.dtype),
                   jax.ShapeDtypeStruct((N, 2, Cout), jnp.float32)),
        grid=(N,),
        in_specs=[
            pl.BlockSpec((1, H, W, Cin), lambda n: (n, 0, 0, 0)),
            pl.BlockSpec((9 * Cin, Cout), lambda n: (0, 0)),
            pl.BlockSpec((1, Cout), lambda n: (0, 0)),
        ],
        out_specs=(
            pl.BlockSpec((1, Ho * Wo, Cout), lambda n: (n, 0, 0)),
            pl.BlockSpec((1, 2, Cout), lambda n: (n, 0, 0)),
        ),
        scratch_shapes=[pltpu.VMEM((H + 2, W + 2, Cin), jnp.float32)],
        compiler_params=pltpu.CompilerParams(
            dimension_semantics=("parallel",)),
    )(x, w.reshape(9 * Cin, Cout), b.reshape(1, Cout))


# --------------------------------------------------------------------------
# Kernel 2: BN (global batch statistics from precomputed sum/sumsq) + ReLU,
#           tiled over rows of a (M, C) slab.
# --------------------------------------------------------------------------
def _bn_relu_kernel(y_ref, st_ref, g_ref, b_ref, o_ref, *, count, eps):
    f32 = jnp.float32
    st = jnp.sum(st_ref[...].astype(f32), axis=0)          # (2, C)
    mean = st[0:1, :] / count
    var = st[1:2, :] / count - mean * mean
    scale = jax.lax.rsqrt(var + eps) * g_ref[...].astype(f32)
    out = (y_ref[...].astype(f32) - mean) * scale + b_ref[...].astype(f32)
    o_ref[...] = jnp.maximum(out, 0.0).astype(o_ref.dtype)


def bn_relu(y2d, stats, gamma, beta, *, count):
    M, C = y2d.shape
    N = stats.shape[0]
    tm = _pick_rows_tile(M)
    kernel = functools.partial(_bn_relu_kernel, count=float(count), eps=_BN_EPS)
    return pl.pallas_call(
        kernel,
        out_shape=jax.ShapeDtypeStruct((M, C), y2d.dtype),
        grid=(M // tm,),
        in_specs=[
            pl.BlockSpec((tm, C), lambda i: (i, 0)),
            pl.BlockSpec((N, 2, C), lambda i: (0, 0, 0)),
            pl.BlockSpec((1, C), lambda i: (0, 0)),
            pl.BlockSpec((1, C), lambda i: (0, 0)),
        ],
        out_specs=pl.BlockSpec((tm, C), lambda i: (i, 0)),
        compiler_params=pltpu.CompilerParams(
            dimension_semantics=("parallel",)),
    )(y2d, stats, gamma.reshape(1, C), beta.reshape(1, C))


# --------------------------------------------------------------------------
# Kernel 3: BN2 + residual add (+ fused 1x1 stride-2 shortcut) + ReLU,
#           tiled over (batch, output-row strips).
# --------------------------------------------------------------------------
def _bn2_ds_add_relu_kernel(z_ref, st_ref, g_ref, b_ref, x_ref, wd_ref, bd_ref,
                            o_ref, *, count, eps, th, Wo, Cin):
    f32 = jnp.float32
    st = jnp.sum(st_ref[...].astype(f32), axis=0)
    mean = st[0:1, :] / count
    var = st[1:2, :] / count - mean * mean
    scale = jax.lax.rsqrt(var + eps) * g_ref[...].astype(f32)
    zn = (z_ref[0].astype(f32) - mean) * scale + b_ref[...].astype(f32)
    # Identity path: fused 1x1 stride-2 conv on the matching input rows.
    xs = x_ref[:, :, pl.ds(0, Wo, stride=2), :]        # even cols (1,2th,Wo,Cin)
    xs = xs.reshape(th, 2, Wo, Cin)[:, 0]              # even rows (th,Wo,Cin)
    ident = jnp.dot(xs.reshape(th * Wo, Cin), wd_ref[...].astype(f32),
                    preferred_element_type=jnp.float32)
    ident = ident + bd_ref[...].astype(f32)
    o_ref[0] = jnp.maximum(zn + ident, 0.0).astype(o_ref.dtype)


def _bn2_id_add_relu_kernel(z_ref, st_ref, g_ref, b_ref, x_ref, o_ref,
                            *, count, eps, th, W, C):
    f32 = jnp.float32
    st = jnp.sum(st_ref[...].astype(f32), axis=0)
    mean = st[0:1, :] / count
    var = st[1:2, :] / count - mean * mean
    scale = jax.lax.rsqrt(var + eps) * g_ref[...].astype(f32)
    zn = (z_ref[0].astype(f32) - mean) * scale + b_ref[...].astype(f32)
    ident = x_ref[0].astype(f32).reshape(th * W, C)
    o_ref[0] = jnp.maximum(zn + ident, 0.0).astype(o_ref.dtype)


def bn2_add_relu(z, stats, gamma, beta, x, wd, bd, *, downsample, count):
    N, HoWo, Cout = z.shape
    _, H, W, Cin = x.shape
    Ho, Wo = (H // 2, W // 2) if downsample else (H, W)
    th = _pick_row_strip(Ho, Wo)
    g2d = gamma.reshape(1, Cout)
    b2d = beta.reshape(1, Cout)
    common_specs = [
        pl.BlockSpec((1, th * Wo, Cout), lambda n, s: (n, s, 0)),
        pl.BlockSpec((N, 2, Cout), lambda n, s: (0, 0, 0)),
        pl.BlockSpec((1, Cout), lambda n, s: (0, 0)),
        pl.BlockSpec((1, Cout), lambda n, s: (0, 0)),
    ]
    if downsample:
        kernel = functools.partial(_bn2_ds_add_relu_kernel, count=float(count),
                                   eps=_BN_EPS, th=th, Wo=Wo, Cin=Cin)
        in_specs = common_specs + [
            pl.BlockSpec((1, 2 * th, W, Cin), lambda n, s: (n, s, 0, 0)),
            pl.BlockSpec((Cin, Cout), lambda n, s: (0, 0)),
            pl.BlockSpec((1, Cout), lambda n, s: (0, 0)),
        ]
        args = (z, stats, g2d, b2d, x, wd, bd.reshape(1, Cout))
    else:
        kernel = functools.partial(_bn2_id_add_relu_kernel, count=float(count),
                                   eps=_BN_EPS, th=th, W=W, C=Cin)
        in_specs = common_specs + [
            pl.BlockSpec((1, th, W, Cin), lambda n, s: (n, s, 0, 0)),
        ]
        args = (z, stats, g2d, b2d, x)
    return pl.pallas_call(
        kernel,
        out_shape=jax.ShapeDtypeStruct((N, HoWo, Cout), z.dtype),
        grid=(N, Ho // th),
        in_specs=in_specs,
        out_specs=pl.BlockSpec((1, th * Wo, Cout), lambda n, s: (n, s, 0)),
        compiler_params=pltpu.CompilerParams(
            dimension_semantics=("parallel", "parallel")),
    )(*args)


# --------------------------------------------------------------------------
# BasicBlock forward
# --------------------------------------------------------------------------
def basic_block_nhwc(x, p):
    N, H, W, Cin = x.shape
    Cout = p["w1"].shape[-1]
    downsample = Cin != Cout
    stride = 2 if downsample else 1
    if downsample:
        assert H % 2 == 0 and W % 2 == 0, "downsample path assumes even H, W"
        Ho, Wo = H // 2, W // 2
    else:
        Ho, Wo = H, W
    M = N * Ho * Wo

    # conv1 (+ bias) with its BN statistics fused into the same kernel.
    y, st1 = conv3x3_bn_stats(x, p["w1"], p["b1"], stride=stride)
    # BN1 (global batch stats) + ReLU, tiled & pipelined over rows.
    y = bn_relu(y.reshape(M, Cout), st1, p["g1"], p["be1"], count=M)
    y = y.reshape(N, Ho, Wo, Cout)

    # conv2 (stride 1) + BN2 statistics.
    z, st2 = conv3x3_bn_stats(y, p["w2"], p["b2"], stride=1)

    # BN2 + residual (1x1 stride-2 shortcut fused when downsampling) + ReLU.
    out = bn2_add_relu(z, st2, p["g2"], p["be2"], x, p.get("wd"), p.get("bd"),
                       downsample=downsample, count=M)
    return out.reshape(N, Ho, Wo, Cout)


def basic_block(x_nchw, p):
    # TODO(synk): fold the NCHW<->NHWC transposes into the first/last kernels
    # (in-kernel relayout) to save two full HBM passes; kept in the wrapper
    # for PyTorch interface parity and lowering robustness.
    x = jnp.transpose(x_nchw, (0, 2, 3, 1))
    out = basic_block_nhwc(x, p)
    return jnp.transpose(out, (0, 3, 1, 2))


# --------------------------------------------------------------------------
# Pure-JAX reference (for correctness check)
# --------------------------------------------------------------------------
def _ref_block(x_nchw, p):
    x = jnp.transpose(x_nchw, (0, 2, 3, 1))
    Cin = x.shape[-1]
    Cout = p["w1"].shape[-1]
    stride = 2 if Cin != Cout else 1

    def conv(v, w, b, s, pad):
        y = jax.lax.conv_general_dilated(
            v, w, (s, s), ((pad, pad), (pad, pad)),
            dimension_numbers=("NHWC", "HWIO", "NHWC"))
        return y + b

    def bn(y, g, be):
        m = jnp.mean(y, axis=(0, 1, 2), keepdims=True)
        v = jnp.mean(jnp.square(y - m), axis=(0, 1, 2), keepdims=True)
        return (y - m) * jax.lax.rsqrt(v + _BN_EPS) * g + be

    h = jax.nn.relu(bn(conv(x, p["w1"], p["b1"], stride, 1), p["g1"], p["be1"]))
    h = bn(conv(h, p["w2"], p["b2"], 1, 1), p["g2"], p["be2"])
    if stride == 2:
        ident = conv(x, p["wd"].reshape(1, 1, Cin, Cout), p["bd"], 2, 0)
    else:
        ident = x
    return jnp.transpose(jax.nn.relu(h + ident), (0, 3, 1, 2))


if __name__ == "__main__":
    key = jax.random.PRNGKey(0)
    ks = jax.random.split(key, 16)

    # case 1: downsample block (Cin != Cout -> stride-2 conv1 + 1x1 shortcut)
    N, Cin, Cout, HW = 2, 4, 8, 16
    x = jax.random.normal(ks[0], (N, Cin, HW, HW), jnp.float32)
    params = {
        "w1": 0.1 * jax.random.normal(ks[1], (3, 3, Cin, Cout), jnp.float32),
        "b1": 0.05 * jax.random.normal(ks[2], (Cout,), jnp.float32),
        "g1": jnp.ones((Cout,), jnp.float32),
        "be1": jnp.zeros((Cout,), jnp.float32),
        "w2": 0.1 * jax.random.normal(ks[3], (3, 3, Cout, Cout), jnp.float32),
        "b2": 0.05 * jax.random.normal(ks[4], (Cout,), jnp.float32),
        "g2": 1.0 + 0.1 * jax.random.normal(ks[5], (Cout,), jnp.float32),
        "be2": 0.1 * jax.random.normal(ks[6], (Cout,), jnp.float32),
        "wd": 0.1 * jax.random.normal(ks[7], (Cin, Cout), jnp.float32),
        "bd": 0.05 * jax.random.normal(ks[8], (Cout,), jnp.float32),
    }
    out = jax.block_until_ready(basic_block(x, params))
    assert out.shape == (N, Cout, HW // 2, HW // 2), out.shape
    ref = _ref_block(x, params)
    err = float(jnp.max(jnp.abs(out - ref)))
    assert jnp.allclose(out, ref, rtol=2e-4, atol=2e-4), err

    # case 2: identity block (Cin == Cout -> stride 1, plain residual add)
    C = 8
    x2 = jax.random.normal(ks[9], (N, C, HW, HW), jnp.float32)
    params2 = {
        "w1": 0.1 * jax.random.normal(ks[10], (3, 3, C, C), jnp.float32),
        "b1": 0.05 * jax.random.normal(ks[11], (C,), jnp.float32),
        "g1": 1.0 + 0.1 * jax.random.normal(ks[12], (C,), jnp.float32),
        "be1": 0.1 * jax.random.normal(ks[13], (C,), jnp.float32),
        "w2": 0.1 * jax.random.normal(ks[14], (3, 3, C, C), jnp.float32),
        "b2": 0.05 * jax.random.normal(ks[15], (C,), jnp.float32),
        "g2": jnp.ones((C,), jnp.float32),
        "be2": jnp.zeros((C,), jnp.float32),
    }
    out2 = jax.block_until_ready(basic_block(x2, params2))
    assert out2.shape == (N, C, HW, HW), out2.shape
    ref2 = _ref_block(x2, params2)
    err2 = float(jnp.max(jnp.abs(out2 - ref2)))
    assert jnp.allclose(out2, ref2, rtol=2e-4, atol=2e-4), err2

    print("KERNEL_OK")
</pallas_src>

<mosaic_0001>
module attributes {stable_mosaic.version = 11 : i64} {
  func.func @_conv3x3_bn_stats_kernel(%arg0: i32, %arg1: memref<1x16x16x4xf32, #tpu.memory_space<vmem>>, %arg2: memref<36x8xf32, #tpu.memory_space<vmem>>, %arg3: memref<1x8xf32, #tpu.memory_space<vmem>>, %arg4: memref<1x64x8xf32, #tpu.memory_space<vmem>>, %arg5: memref<1x2x8xf32, #tpu.memory_space<vmem>>, %arg6: memref<18x18x4xf32, #tpu.memory_space<vmem>>) attributes {dimension_semantics = [#tpu.dimension_semantics<parallel>], iteration_bounds = array<i64: 2>, scalar_prefetch = 0 : i64, scratch_operands = 1 : i64, tpu.core_type = #tpu.core_type<tc>, window_params = [{transform_indices = @transform_0, window_bounds = array<i64: 1, 16, 16, 4>}, {pipeline_mode = #tpu.pipeline_mode<synchronous>, transform_indices = @transform_1, window_bounds = array<i64: 36, 8>}, {pipeline_mode = #tpu.pipeline_mode<synchronous>, transform_indices = @transform_2, window_bounds = array<i64: 1, 8>}, {transform_indices = @transform_3, window_bounds = array<i64: 1, 64, 8>}, {transform_indices = @transform_4, window_bounds = array<i64: 1, 2, 8>}]} {
    %cst = arith.constant 0.000000e+00 : f32
    %0 = vector.broadcast %cst : f32 to vector<1x18x4xf32>
    %c0 = arith.constant 0 : index
    %c0_0 = arith.constant 0 : index
    %c0_1 = arith.constant 0 : index
    %1 = vector.load %arg6[%c0, %c0_0, %c0_1] : memref<18x18x4xf32, #tpu.memory_space<vmem>>, vector<1x18x4xf32>
    tpu.vector_store %arg6[%c0, %c0_0, %c0_1], %0 {strides = array<i32>} : memref<18x18x4xf32, #tpu.memory_space<vmem>>, vector<1x18x4xf32>,
    %c17 = arith.constant 17 : index
    %c0_2 = arith.constant 0 : index
    %c0_3 = arith.constant 0 : index
    %2 = vector.load %arg6[%c17, %c0_2, %c0_3] : memref<18x18x4xf32, #tpu.memory_space<vmem>>, vector<1x18x4xf32>
    tpu.vector_store %arg6[%c17, %c0_2, %c0_3], %0 {strides = array<i32>} : memref<18x18x4xf32, #tpu.memory_space<vmem>>, vector<1x18x4xf32>,
    %cst_4 = arith.constant 0.000000e+00 : f32
    %3 = vector.broadcast %cst_4 : f32 to vector<18x1x4xf32>
    %c0_5 = arith.constant 0 : index
    %c0_6 = arith.constant 0 : index
    %c0_7 = arith.constant 0 : index
    %4 = vector.load %arg6[%c0_5, %c0_6, %c0_7] : memref<18x18x4xf32, #tpu.memory_space<vmem>>, vector<18x1x4xf32>
    tpu.vector_store %arg6[%c0_5, %c0_6, %c0_7], %3 {strides = array<i32>} : memref<18x18x4xf32, #tpu.memory_space<vmem>>, vector<18x1x4xf32>,
    %c0_8 = arith.constant 0 : index
    %c17_9 = arith.constant 17 : index
    %c0_10 = arith.constant 0 : index
    %5 = vector.load %arg6[%c0_8, %c17_9, %c0_10] : memref<18x18x4xf32, #tpu.memory_space<vmem>>, vector<18x1x4xf32>
    tpu.vector_store %arg6[%c0_8, %c17_9, %c0_10], %3 {strides = array<i32>} : memref<18x18x4xf32, #tpu.memory_space<vmem>>, vector<18x1x4xf32>,
    %c0_11 = arith.constant 0 : index
    %c0_12 = arith.constant 0 : index
    %c0_13 = arith.constant 0 : index
    %c0_14 = arith.constant 0 : index
    %6 = vector.load %arg1[%c0_11, %c0_12, %c0_13, %c0_14] : memref<1x16x16x4xf32, #tpu.memory_space<vmem>>, vector<1x16x16x4xf32>
    %7 = vector.shape_cast %6 : vector<1x16x16x4xf32> to vector<16x16x4xf32>
    %c1 = arith.constant 1 : index
    %c1_15 = arith.constant 1 : index
    %c0_16 = arith.constant 0 : index
    %8 = vector.load %arg6[%c1, %c1_15, %c0_16] : memref<18x18x4xf32, #tpu.memory_space<vmem>>, vector<16x16x4xf32>
    tpu.vector_store %arg6[%c1, %c1_15, %c0_16], %7 {strides = array<i32>} : memref<18x18x4xf32, #tpu.memory_space<vmem>>, vector<16x16x4xf32>,
    %c0_17 = arith.constant 0 : index
    %c0_18 = arith.constant 0 : index
    %c0_19 = arith.constant 0 : index
    %9 = tpu.strided_load %arg6[%c0_17, %c0_18, %c0_19] {strides = array<i32: 1, 2, 1>} : memref<18x18x4xf32, #tpu.memory_space<vmem>>, vector<18x9x4xf32>
    %c0_20 = arith.constant 0 : index
    %c1_21 = arith.constant 1 : index
    %c0_22 = arith.constant 0 : index
    %10 = tpu.strided_load %arg6[%c0_20, %c1_21, %c0_22] {strides = array<i32: 1, 2, 1>} : memref<18x18x4xf32, #tpu.memory_space<vmem>>, vector<18x9x4xf32>
    %11 = vector.extract_strided_slice %9 {offsets = [0, 0, 0], sizes = [16, 9, 4], strides = [1, 1, 1]} : vector<18x9x4xf32> to vector<16x9x4xf32>
    %12 = vector.shape_cast %11 : vector<16x9x4xf32> to vector<8x2x9x4xf32>
    %13 = vector.extract_strided_slice %12 {offsets = [0, 0, 0, 0], sizes = [8, 1, 9, 4], strides = [1, 1, 1, 1]} : vector<8x2x9x4xf32> to vector<8x1x9x4xf32>
    %14 = vector.shape_cast %13 : vector<8x1x9x4xf32> to vector<8x9x4xf32>
    %15 = vector.extract_strided_slice %14 {offsets = [0, 0, 0], sizes = [8, 8, 4], strides = [1, 1, 1]} : vector<8x9x4xf32> to vector<8x8x4xf32>
    %16 = vector.shape_cast %15 : vector<8x8x4xf32> to vector<64x4xf32>
    %17 = vector.extract_strided_slice %10 {offsets = [0, 0, 0], sizes = [16, 9, 4], strides = [1, 1, 1]} : vector<18x9x4xf32> to vector<16x9x4xf32>
    %18 = vector.shape_cast %17 : vector<16x9x4xf32> to vector<8x2x9x4xf32>
    %19 = vector.extract_strided_slice %18 {offsets = [0, 0, 0, 0], sizes = [8, 1, 9, 4], strides = [1, 1, 1, 1]} : vector<8x2x9x4xf32> to vector<8x1x9x4xf32>
    %20 = vector.shape_cast %19 : vector<8x1x9x4xf32> to vector<8x9x4xf32>
    %21 = vector.extract_strided_slice %20 {offsets = [0, 0, 0], sizes = [8, 8, 4], strides = [1, 1, 1]} : vector<8x9x4xf32> to vector<8x8x4xf32>
    %22 = vector.shape_cast %21 : vector<8x8x4xf32> to vector<64x4xf32>
    %23 = vector.extract_strided_slice %9 {offsets = [0, 0, 0], sizes = [16, 9, 4], strides = [1, 1, 1]} : vector<18x9x4xf32> to vector<16x9x4xf32>
    %24 = vector.shape_cast %23 : vector<16x9x4xf32> to vector<8x2x9x4xf32>
    %25 = vector.extract_strided_slice %24 {offsets = [0, 0, 0, 0], sizes = [8, 1, 9, 4], strides = [1, 1, 1, 1]} : vector<8x2x9x4xf32> to vector<8x1x9x4xf32>
    %26 = vector.shape_cast %25 : vector<8x1x9x4xf32> to vector<8x9x4xf32>
    %27 = vector.extract_strided_slice %26 {offsets = [0, 1, 0], sizes = [8, 8, 4], strides = [1, 1, 1]} : vector<8x9x4xf32> to vector<8x8x4xf32>
    %28 = vector.shape_cast %27 : vector<8x8x4xf32> to vector<64x4xf32>
    %29 = vector.extract_strided_slice %9 {offsets = [1, 0, 0], sizes = [16, 9, 4], strides = [1, 1, 1]} : vector<18x9x4xf32> to vector<16x9x4xf32>
    %30 = vector.shape_cast %29 : vector<16x9x4xf32> to vector<8x2x9x4xf32>
    %31 = vector.extract_strided_slice %30 {offsets = [0, 0, 0, 0], sizes = [8, 1, 9, 4], strides = [1, 1, 1, 1]} : vector<8x2x9x4xf32> to vector<8x1x9x4xf32>
    %32 = vector.shape_cast %31 : vector<8x1x9x4xf32> to vector<8x9x4xf32>
    %33 = vector.extract_strided_slice %32 {offsets = [0, 0, 0], sizes = [8, 8, 4], strides = [1, 1, 1]} : vector<8x9x4xf32> to vector<8x8x4xf32>
    %34 = vector.shape_cast %33 : vector<8x8x4xf32> to vector<64x4xf32>
    %35 = vector.extract_strided_slice %10 {offsets = [1, 0, 0], sizes = [16, 9, 4], strides = [1, 1, 1]} : vector<18x9x4xf32> to vector<16x9x4xf32>
    %36 = vector.shape_cast %35 : vector<16x9x4xf32> to vector<8x2x9x4xf32>
    %37 = vector.extract_strided_slice %36 {offsets = [0, 0, 0, 0], sizes = [8, 1, 9, 4], strides = [1, 1, 1, 1]} : vector<8x2x9x4xf32> to vector<8x1x9x4xf32>
    %38 = vector.shape_cast %37 : vector<8x1x9x4xf32> to vector<8x9x4xf32>
    %39 = vector.extract_strided_slice %38 {offsets = [0, 0, 0], sizes = [8, 8, 4], strides = [1, 1, 1]} : vector<8x9x4xf32> to vector<8x8x4xf32>
    %40 = vector.shape_cast %39 : vector<8x8x4xf32> to vector<64x4xf32>
    %41 = vector.extract_strided_slice %9 {offsets = [1, 0, 0], sizes = [16, 9, 4], strides = [1, 1, 1]} : vector<18x9x4xf32> to vector<16x9x4xf32>
    %42 = vector.shape_cast %41 : vector<16x9x4xf32> to vector<8x2x9x4xf32>
    %43 = vector.extract_strided_slice %42 {offsets = [0, 0, 0, 0], sizes = [8, 1, 9, 4], strides = [1, 1, 1, 1]} : vector<8x2x9x4xf32> to vector<8x1x9x4xf32>
    %44 = vector.shape_cast %43 : vector<8x1x9x4xf32> to vector<8x9x4xf32>
    %45 = vector.extract_strided_slice %44 {offsets = [0, 1, 0], sizes = [8, 8, 4], strides = [1, 1, 1]} : vector<8x9x4xf32> to vector<8x8x4xf32>
    %46 = vector.shape_cast %45 : vector<8x8x4xf32> to vector<64x4xf32>
    %47 = vector.extract_strided_slice %9 {offsets = [2, 0, 0], sizes = [16, 9, 4], strides = [1, 1, 1]} : vector<18x9x4xf32> to vector<16x9x4xf32>
    %48 = vector.shape_cast %47 : vector<16x9x4xf32> to vector<8x2x9x4xf32>
    %49 = vector.extract_strided_slice %48 {offsets = [0, 0, 0, 0], sizes = [8, 1, 9, 4], strides = [1, 1, 1, 1]} : vector<8x2x9x4xf32> to vector<8x1x9x4xf32>
    %50 = vector.shape_cast %49 : vector<8x1x9x4xf32> to vector<8x9x4xf32>
    %51 = vector.extract_strided_slice %50 {offsets = [0, 0, 0], sizes = [8, 8, 4], strides = [1, 1, 1]} : vector<8x9x4xf32> to vector<8x8x4xf32>
    %52 = vector.shape_cast %51 : vector<8x8x4xf32> to vector<64x4xf32>
    %53 = vector.extract_strided_slice %10 {offsets = [2, 0, 0], sizes = [16, 9, 4], strides = [1, 1, 1]} : vector<18x9x4xf32> to vector<16x9x4xf32>
    %54 = vector.shape_cast %53 : vector<16x9x4xf32> to vector<8x2x9x4xf32>
    %55 = vector.extract_strided_slice %54 {offsets = [0, 0, 0, 0], sizes = [8, 1, 9, 4], strides = [1, 1, 1, 1]} : vector<8x2x9x4xf32> to vector<8x1x9x4xf32>
    %56 = vector.shape_cast %55 : vector<8x1x9x4xf32> to vector<8x9x4xf32>
    %57 = vector.extract_strided_slice %56 {offsets = [0, 0, 0], sizes = [8, 8, 4], strides = [1, 1, 1]} : vector<8x9x4xf32> to vector<8x8x4xf32>
    %58 = vector.shape_cast %57 : vector<8x8x4xf32> to vector<64x4xf32>
    %59 = vector.extract_strided_slice %9 {offsets = [2, 0, 0], sizes = [16, 9, 4], strides = [1, 1, 1]} : vector<18x9x4xf32> to vector<16x9x4xf32>
    %60 = vector.shape_cast %59 : vector<16x9x4xf32> to vector<8x2x9x4xf32>
    %61 = vector.extract_strided_slice %60 {offsets = [0, 0, 0, 0], sizes = [8, 1, 9, 4], strides = [1, 1, 1, 1]} : vector<8x2x9x4xf32> to vector<8x1x9x4xf32>
    %62 = vector.shape_cast %61 : vector<8x1x9x4xf32> to vector<8x9x4xf32>
    %63 = vector.extract_strided_slice %62 {offsets = [0, 1, 0], sizes = [8, 8, 4], strides = [1, 1, 1]} : vector<8x9x4xf32> to vector<8x8x4xf32>
    %64 = vector.shape_cast %63 : vector<8x8x4xf32> to vector<64x4xf32>
    %65 = tpu.concatenate %16, %22, %28, %34, %40, %46, %52, %58, %64 in 1 : vector<64x4xf32>, vector<64x4xf32>, vector<64x4xf32>, vector<64x4xf32>, vector<64x4xf32>, vector<64x4xf32>, vector<64x4xf32>, vector<64x4xf32>, vector<64x4xf32> -> vector<64x36xf32>
    %c0_23 = arith.constant 0 : index
    %c0_24 = arith.constant 0 : index
    %66 = vector.load %arg2[%c0_23, %c0_24] : memref<36x8xf32, #tpu.memory_space<vmem>>, vector<36x8xf32>
    %cst_25 = arith.constant dense<0.000000e+00> : vector<64x8xf32>
    %67 = tpu.matmul %65, %66, %cst_25 {dimension_numbers = #tpu.dot_dimension_numbers<[1], [0], [0], [1], [0, 0, 1, 1], [], []>} : vector<64x36xf32>, vector<36x8xf32>, vector<64x8xf32> -> vector<64x8xf32>
    %c0_26 = arith.constant 0 : index
    %c0_27 = arith.constant 0 : index
    %68 = vector.load %arg3[%c0_26, %c0_27] : memref<1x8xf32, #tpu.memory_space<vmem>>, vector<1x8xf32>
    %69 = vector.broadcast %68 : vector<1x8xf32> to vector<64x8xf32>
    %70 = arith.addf %67, %69 : vector<64x8xf32>
    %c0_28 = arith.constant 0 : index
    %c0_29 = arith.constant 0 : index
    %c0_30 = arith.constant 0 : index
    %71 = vector.load %arg4[%c0_28, %c0_29, %c0_30] : memref<1x64x8xf32, #tpu.memory_space<vmem>>, vector<1x64x8xf32>
    %72 = vector.shape_cast %71 : vector<1x64x8xf32> to vector<64x8xf32>
    %73 = vector.shape_cast %70 : vector<64x8xf32> to vector<1x64x8xf32>
    tpu.vector_store %arg4[%c0_28, %c0_29, %c0_30], %73 {strides = array<i32>} : memref<1x64x8xf32, #tpu.memory_space<vmem>>, vector<1x64x8xf32>,
    %cst_31 = arith.constant dense<0.000000e+00> : vector<8xf32>
    %74 = vector.multi_reduction <add>, %70, %cst_31 [0] : vector<64x8xf32> to vector<8xf32>
    %75 = vector.shape_cast %74 : vector<8xf32> to vector<1x8xf32>
    %76 = arith.mulf %70, %70 : vector<64x8xf32>
    %cst_32 = arith.constant dense<0.000000e+00> : vector<8xf32>
    %77 = vector.multi_reduction <add>, %76, %cst_32 [0] : vector<64x8xf32> to vector<8xf32>
    %78 = vector.shape_cast %77 : vector<8xf32> to vector<1x8xf32>
    %79 = tpu.concatenate %75, %78 in 0 : vector<1x8xf32>, vector<1x8xf32> -> vector<2x8xf32>
    %c0_33 = arith.constant 0 : index
    %c0_34 = arith.constant 0 : index
    %c0_35 = arith.constant 0 : index
    %80 = vector.load %arg5[%c0_33, %c0_34, %c0_35] : memref<1x2x8xf32, #tpu.memory_space<vmem>>, vector<1x2x8xf32>
    %81 = vector.shape_cast %80 : vector<1x2x8xf32> to vector<2x8xf32>
    %82 = vector.shape_cast %79 : vector<2x8xf32> to vector<1x2x8xf32>
    tpu.vector_store %arg5[%c0_33, %c0_34, %c0_35], %82 {strides = array<i32>} : memref<1x2x8xf32, #tpu.memory_space<vmem>>, vector<1x2x8xf32>,
    return
  }
  func.func @transform_0(%arg0: i32) -> (i32, i32, i32, i32) {
    %c0_i32 = arith.constant 0 : i32
    %c0_i32_0 = arith.constant 0 : i32
    %c0_i32_1 = arith.constant 0 : i32
    %c0_i32_2 = arith.constant 0 : i32
    return %arg0, %c0_i32, %c0_i32_0, %c0_i32_1 : i32, i32, i32, i32
  }
  func.func @transform_1(%arg0: i32) -> (i32, i32) {
    %c0_i32 = arith.constant 0 : i32
    %c0_i32_0 = arith.constant 0 : i32
    %c0_i32_1 = arith.constant 0 : i32
    return %c0_i32, %c0_i32_0 : i32, i32
  }
  func.func @transform_2(%arg0: i32) -> (i32, i32) {
    %c0_i32 = arith.constant 0 : i32
    %c0_i32_0 = arith.constant 0 : i32
    %c0_i32_1 = arith.constant 0 : i32
    return %c0_i32, %c0_i32_0 : i32, i32
  }
  func.func @transform_3(%arg0: i32) -> (i32, i32, i32) {
    %c0_i32 = arith.constant 0 : i32
    %c0_i32_0 = arith.constant 0 : i32
    %c0_i32_1 = arith.constant 0 : i32
    return %arg0, %c0_i32, %c0_i32_0 : i32, i32, i32
  }
  func.func @transform_4(%arg0: i32) -> (i32, i32, i32) {
    %c0_i32 = arith.constant 0 : i32
    %c0_i32_0 = arith.constant 0 : i32
    %c0_i32_1 = arith.constant 0 : i32
    return %arg0, %c0_i32, %c0_i32_0 : i32, i32, i32
  }
}

</mosaic_0001>

<bundles_post_ra>
// kernel: tpu_custom_call.1
= control target key start
LH: loop header
LB: loop body
LE: loop exit
PB: predicated region body
PF: predicated region fallthrough
CT: control target
= control target key end

     0   :  { %10 = vsyncpa [#allocation4], 0  ;;  %s1786_s0 = inlined_call_operand.vmem [shape: f32[2,16,16,4], index: 0, kind: input, shape index: {}]   ;;  %s1787_s1 = inlined_call_operand.vmem [shape: f32[36,8], index: 1, kind: input, shape index: {}]   ;;  %s1788_s2 = inlined_call_operand.vmem [shape: f32[1,8], index: 2, kind: input, shape index: {}]   ;;  %s1789_s3 = inlined_call_operand.vmem [shape: f32[2,64,8], index: 3, kind: output, shape index: {0}]   ;;  %s1790_s4 = inlined_call_operand.hbm [shape: f32[2,2,8], index: 4, kind: output, shape index: {1}]  }
   0x1   :  { %12 = vsyncpa [#allocation4 + $0x1], 0  ;;  %s1322_s15 = smov 0   ;;  %s1324_s16 = smov 0  }
   0x2   :  { %s1326_s17 = smov 0   ;;  %s1328_s18 = smov 0  }
   0x3 LB: > { %s1343_s19 = sadd.s32 4294967295, %s1285_s18   ;;  %s1101_s20 = sadd.s32 4294967294, %s1285_s18   ;;  %s1285_s18 = sphi %s1328_s18, %s1796_s18   ;;  %s1281_s17 = sphi %s1326_s17, %s1795_s17   ;;  %s1277_s16 = sphi %s1324_s16, %s1794_s16   ;;  %s1273_s15 = sphi %s1322_s15, %s1793_s15  }
   0x4   : > { %s1347_s21 = sadd.s32 1, %s1285_s18   ;;  %s119_s22 = sadd.s32 1, %s1281_s17 }
   0x5   : > { %s116_s23 = ssub.s32 %s1285_s18, %s1347_s21  ;;  %p129_p0 = scmp.ne.s32.totalorder %s1281_s17, %s1277_s16 }
   0x6   : > { %p117_p1 = scmp.eq.s32.totalorder %s116_s23, 0  ;;  %p130_p2 = scmp.eq.s32.totalorder %s1343_s19, 1 }
   0x7   : > { %p135_p3 = scmp.ne.s32.totalorder %s1277_s16, %s1273_s15  ;;  %p136_p4 = scmp.eq.s32.totalorder %s1101_s20, 1 }
   0x8   : > { %s1358_s24 = scalar_select %p117_p1, %s1281_s17, %s119_s22  }
   0x9   : > { %p1360_p5 = por %p130_p2, %p129_p0  ;;  %p1364_p6 = por %p136_p4, %p135_p3 }
   0xa   : > { %p1104_p7 = scmp.ge.s32.totalorder %s1285_s18, 1  ;;  %p168_p8 = scmp.lt.s32.totalorder %s1285_s18, 3 }
   0xc   : > { %p169_p9 = pnand %p1104_p7, %p168_p8 }
   0xd   : > { %vm209_vm0 = vcmask (!%p169_p9), 31744   ;;  %vm218_vm1 = vcmask (!%p169_p9), 24576   ;;  %vm212_vm2 = vcmask (!%p169_p9), 25600   ;;  %v1287_v0 = vmov (!%p169_p9), 0.0   ;;  %p199_p10 = scmp.lt.s32.totalorder (!%p169_p9), %s1343_s19, 1  ;;  %s1288_s6 = smov (!%p169_p9), 4  }
   0xe   : > { %172 = sbr.rel (%p169_p9) target bundleno = 524 (0x20c), region = 32  ;;  %210 = vst.msk [vmem:[#allocation2] sm:$0xff] (!%p169_p9), %vm209_vm0, %v1287_v0  ;;  %211 = vst.msk [vmem:[#allocation2 + $0x8] sm:$0xff] (!%p169_p9), %vm209_vm0, %v1287_v0  ;;  %vm437_vm3 = vcmask (!%p169_p9), 1046528   ;;  %s1289_s7 = smov (!%p169_p9), 8   ;;  %vm824_vm4 = vcmask (!%p169_p9), 1043456  }
   0xf   : > { %220 = vst.msk [vmem:[#allocation2 + $0x18] sm:$0x1] (!%p169_p9), %vm218_vm1, %v1287_v0  ;;  %221 = vst.msk [vmem:[#allocation2 + $0x30] sm:$0x1] (!%p169_p9), %vm218_vm1, %v1287_v0  ;;  %s1290_s8 = smov (!%p169_p9), 12   ;;  %s1291_s9 = smov (!%p169_p9), 16  }
  0x10   : > { %222 = vst.msk [vmem:[#allocation2 + $0x48] sm:$0x1] (!%p169_p9), %vm218_vm1, %v1287_v0  ;;  %223 = vst.msk [vmem:[#allocation2 + $0x60] sm:$0x1] (!%p169_p9), %vm218_vm1, %v1287_v0  ;;  %s1292_s10 = smov (!%p169_p9), 20   ;;  %s1293_s11 = smov (!%p169_p9), 24  }
  0x11   : > { %224 = vst.msk [vmem:[#allocation2 + $0x78] sm:$0x1] (!%p169_p9), %vm218_vm1, %v1287_v0  ;;  %225 = vst.msk [vmem:[#allocation2 + $0x90] sm:$0x1] (!%p169_p9), %vm218_vm1, %v1287_v0  ;;  %s1294_s30 = smov (!%p169_p9), 28   ;;  %s1295_s13 = smov (!%p169_p9), 32  }
  0x12   : > { %226 = vst.msk [vmem:[#allocation2 + $0xa8] sm:$0x1] (!%p169_p9), %vm218_vm1, %v1287_v0  ;;  %227 = vst.msk [vmem:[#allocation2 + $0xc0] sm:$0x1] (!%p169_p9), %vm218_vm1, %v1287_v0  ;;  %vm724_vm5 = vcmask (!%p169_p9), 64512   ;;  %vm733_vm6 = vcmask (!%p169_p9), 97280  }
  0x13   : > { %228 = vst.msk [vmem:[#allocation2 + $0xd8] sm:$0x1] (!%p169_p9), %vm218_vm1, %v1287_v0  ;;  %229 = vst.msk [vmem:[#allocation2 + $0xf0] sm:$0x1] (!%p169_p9), %vm218_vm1, %v1287_v0  ;;  %vm742_vm7 = vcmask (!%p169_p9), 130048   ;;  %vm751_vm8 = vcmask (!%p169_p9), 162816  }
  0x14   : > { %230 = vst.msk [vmem:[#allocation2 + $0x108] sm:$0x1] (!%p169_p9), %vm218_vm1, %v1287_v0  ;;  %231 = vst.msk [vmem:[#allocation2 + $0x120] sm:$0x1] (!%p169_p9), %vm218_vm1, %v1287_v0  ;;  %vm760_vm9 = vcmask (!%p169_p9), 195584   ;;  %vm769_vm10 = vcmask (!%p169_p9), 228352  }
  0x15   : > { %232 = vst.msk [vmem:[#allocation2 + $0x138] sm:$0x1] %vm218_vm1, %v1287_v0  ;;  %233 = vst.msk [vmem:[#allocation2 + $0x150] sm:$0x1] %vm218_vm1, %v1287_v0  ;;  %s1392_s27 = scalar_select %p199_p10, %s1343_s19, 1  ;;  %vm778_vm11 = vcmask 261120  }
  0x16   : > { %234 = vst.msk [vmem:[#allocation2 + $0x168] sm:$0x1] %vm218_vm1, %v1287_v0  ;;  %235 = vst.msk [vmem:[#allocation2 + $0x180] sm:$0x1] %vm218_vm1, %v1287_v0  ;;  %v388_v4 = vld [vmem:[#allocation2 + $0x1] ss:$2 sm:$0xff] }
  0x17   : > { %213 = vst.msk [vmem:[#allocation2 + $0x10] sm:$0x3] %vm212_vm2, %v1287_v0  ;;  %s1124_s28 = sshll.u32 %s1392_s27, 8  ;;  %515 = vrot.lane.b32.xlu0 %v388_v4, %s1288_s6  ;;  %vm799_vm12 = vcmask 293888   ;;  %s1121_s20 = sshll.u32 %s1343_s19, 5  ;;  %vm991_vm13 = vcmask 1040384  }
  0x18   : > { %219 = vst.msk [vmem:[#allocation2] sm:$0x1] %vm218_vm1, %v1287_v0  ;;  %s1398_s5 = scalar_lea.vmem %s1786_s0, %s1124_s28  ;;  %vm993_vm14 = vcmask 58368   ;;  %s1296_s12 = smov [#allocation3]  }
  0x19   : > { %v257_v1 = vld [vmem:[%s1398_s5 + $0x10] sm:$0xff]  ;;  %v258_v2 = vld [vmem:[%s1398_s5 + $0x18] sm:$0xff]  ;;  %v259_v3 = vld [vmem:[%s1398_s5 + $0x20] sm:$0xff] }
  0x1a   : > { %290 = vst.msk [vmem:[#allocation2 + $0x31] sm:$0xff] %vm209_vm0, %v257_v1  ;;  %291 = vst.msk [vmem:[#allocation2 + $0x39] sm:$0xff] %vm209_vm0, %v258_v2  ;;  %v260_v6 = vld [vmem:[%s1398_s5 + $0x28] sm:$0xff]  ;;  %v255_v9 = vld [vmem:[%s1398_s5] sm:$0xff] }
  0x1b   : > { %292 = vst.msk [vmem:[#allocation2 + $0x49] sm:$0xff] %vm209_vm0, %v259_v3  ;;  %293 = vst.msk [vmem:[#allocation2 + $0x51] sm:$0xff] %vm209_vm0, %v260_v6  ;;  %v256_v10 = vld [vmem:[%s1398_s5 + $0x8] sm:$0xff]  ;;  %v261_v12 = vld [vmem:[%s1398_s5 + $0x30] sm:$0xff] }
  0x1c   : > { %288 = vst.msk [vmem:[#allocation2 + $0x19] sm:$0xff] %vm209_vm0, %v255_v9  ;;  %289 = vst.msk [vmem:[#allocation2 + $0x21] sm:$0xff] %vm209_vm0, %v256_v10  ;;  %v262_v13 = vld [vmem:[%s1398_s5 + $0x38] sm:$0xff]  ;;  %v265_v14 = vld [vmem:[%s1398_s5 + $0x50] sm:$0xff] }
  0x1d   : > { %294 = vst.msk [vmem:[#allocation2 + $0x61] sm:$0xff] %vm209_vm0, %v261_v12  ;;  %295 = vst.msk [vmem:[#allocation2 + $0x69] sm:$0xff] %vm209_vm0, %v262_v13  ;;  %v266_v15 = vld [vmem:[%s1398_s5 + $0x58] sm:$0xff]  ;;  %v263_v16 = vld [vmem:[%s1398_s5 + $0x40] sm:$0xff] }
  0x1e   : > { %v322_v5 = vld [vmem:[#allocation2 + $0x10] ss:$2 sm:$0x1]  ;;  %298 = vst.msk [vmem:[#allocation2 + $0x91] sm:$0xff] %vm209_vm0, %v265_v14  ;;  %v264_v17 = vld [vmem:[%s1398_s5 + $0x48] sm:$0xff]  ;;  %299 = vst.msk [vmem:[#allocation2 + $0x99] sm:$0xff] %vm209_vm0, %v266_v15 }
  0x1f   : > { %v1408_v7 = vld [vmem:[#allocation2] ss:$2 sm:$0xff]  ;;  %v439_v8 = vrot.slane %v322_v5, 1  ;;  %296 = vst.msk [vmem:[#allocation2 + $0x79] sm:$0xff] %vm209_vm0, %v263_v16  ;;  %297 = vst.msk [vmem:[#allocation2 + $0x81] sm:$0xff] %vm209_vm0, %v264_v17  ;;  %v269_v21 = vld [vmem:[%s1398_s5 + $0x70] sm:$0xff] }
  0x20   : > { %v438_v11 = vrot.slane %v1408_v7, 1  ;;  %v267_v19 = vld [vmem:[%s1398_s5 + $0x60] sm:$0xff]  ;;  %v268_v20 = vld [vmem:[%s1398_s5 + $0x68] sm:$0xff]  ;;  %v270_v22 = vld [vmem:[%s1398_s5 + $0x78] sm:$0xff]  ;;  %302 = vst.msk [vmem:[#allocation2 + $0xc1] sm:$0xff] %vm209_vm0, %v269_v21 }
  0x21   : > { %300 = vst.msk [vmem:[#allocation2 + $0xa9] sm:$0xff] %vm209_vm0, %v267_v19  ;;  %301 = vst.msk [vmem:[#allocation2 + $0xb1] sm:$0xff] %vm209_vm0, %v268_v20  ;;  %v273_v23 = vld [vmem:[%s1398_s5 + $0x90] sm:$0xff]  ;;  %v274_v24 = vld [vmem:[%s1398_s5 + $0x98] sm:$0xff] }
  0x22   : > { %v440_v18 = vsel %vm437_vm3, %v438_v11, %v439_v8  ;;  %303 = vst.msk [vmem:[#allocation2 + $0xc9] sm:$0xff] %vm209_vm0, %v270_v22  ;;  %306 = vst.msk [vmem:[#allocation2 + $0xf1] sm:$0xff] %vm209_vm0, %v273_v23  ;;  %v271_v25 = vld [vmem:[%s1398_s5 + $0x80] sm:$0xff]  ;;  %v272_v26 = vld [vmem:[%s1398_s5 + $0x88] sm:$0xff] }
  0x23   : > { %539 = vrot.lane.b32.xlu1 %v440_v18, %s1289_s7  ;;  %307 = vst.msk [vmem:[#allocation2 + $0xf9] sm:$0xff] %vm209_vm0, %v274_v24  ;;  %v275_v27 = vld [vmem:[%s1398_s5 + $0xa0] sm:$0xff]  ;;  %v1445_v28 = vld [vmem:[#allocation2 + $0x31] ss:$2 sm:$0xff]  ;;  %v1447_v29 = vld [vmem:[#allocation2 + $0x30] ss:$2 sm:$0xff] }
  0x24   : > { %304 = vst.msk [vmem:[#allocation2 + $0xd9] sm:$0xff] %vm209_vm0, %v271_v25  ;;  %305 = vst.msk [vmem:[#allocation2 + $0xe1] sm:$0xff] %vm209_vm0, %v272_v26  ;;  %v276_v30 = vld [vmem:[%s1398_s5 + $0xa8] sm:$0xff]  ;;  %517 = vrot.lane.b32.xlu0 %v1445_v28, %s1288_s6  ;;  %v330_v32 = vld [vmem:[#allocation2 + $0x40] ss:$2 sm:$0x1] }
  0x25   : > { %308 = vst.msk [vmem:[#allocation2 + $0x109] sm:$0xff] %vm209_vm0, %v275_v27  ;;  %v332_v31 = vld [vmem:[#allocation2 + $0x48] ss:$2 sm:$0xff]  ;;  %309 = vst.msk [vmem:[#allocation2 + $0x111] sm:$0xff] %vm209_vm0, %v276_v30  ;;  %v324_v33 = vld [vmem:[#allocation2 + $0x18] ss:$2 sm:$0xff] }
  0x26   : > { %v1457_v34 = vld [vmem:[#allocation2 + $0x61] ss:$2 sm:$0xff]  ;;  %v441_v35 = vrot.slane %v1447_v29, 1  ;;  %v442_v36 = vrot.slane %v330_v32, 1  ;;  %v277_v37 = vld [vmem:[%s1398_s5 + $0xb0] sm:$0xff]  ;;  %v278_v39 = vld [vmem:[%s1398_s5 + $0xb8] sm:$0xff] }
  0x27   : > { %565 = vrot.lane.b32.xlu1 %v332_v31, %s1290_s8  ;;  %v326_v38 = vld [vmem:[#allocation2 + $0x28] ss:$2 sm:$0x1]  ;;  %310 = vst.msk [vmem:[#allocation2 + $0x121] sm:$0xff] %vm209_vm0, %v277_v37  ;;  %311 = vst.msk [vmem:[#allocation2 + $0x129] sm:$0xff] %vm209_vm0, %v278_v39  ;;  %v281_v41 = vld [vmem:[%s1398_s5 + $0xd0] sm:$0xff] }
  0x28   : > { %563 = vrot.lane.b32.xlu0 %v324_v33, %s1290_s8  ;;  %v390_v40 = vld [vmem:[#allocation2 + $0x19] ss:$2 sm:$0xff]  ;;  %v478_v42 = vrot.slane %v324_v33, 1  ;;  %v1469_v43 = vsel %vm437_vm3, %v441_v35, %v442_v36  ;;  %v479_v44 = vrot.slane %v326_v38, 1  ;;  %314 = vst.msk [vmem:[#allocation2 + $0x151] sm:$0xff] %vm209_vm0, %v281_v41  ;;  %v280_v54 = vld [vmem:[%s1398_s5 + $0xc8] sm:$0xff] }
  0x29   : > { %v1472_v45 = vld [vmem:[#allocation2 + $0x60] ss:$2 sm:$0xff]  ;;  %v338_v46 = vld [vmem:[#allocation2 + $0x70] ss:$2 sm:$0x1]  ;;  %v282_v48 = vld [vmem:[%s1398_s5 + $0xd8] sm:$0xff] }
  0x2a   : > { %v394_v47 = vld [vmem:[#allocation2 + $0x49] ss:$2 sm:$0xff]  ;;  %v480_v49 = vsel %vm437_vm3, %v478_v42, %v479_v44  ;;  %v444_v50 = vrot.slane %v1472_v45, 1  ;;  %v445_v51 = vrot.slane %v338_v46, 1  ;;  %315 = vst.msk [vmem:[#allocation2 + $0x159] sm:$0xff] %vm209_vm0, %v282_v48  ;;  %v279_v53 = vld [vmem:[%s1398_s5 + $0xc0] sm:$0xff] }
  0x2b   : > { %519 = vrot.lane.b32.xlu1 %v1457_v34, %s1288_s6  ;;  %v334_v52 = vld [vmem:[#allocation2 + $0x58] ss:$2 sm:$0x1]  ;;  %312 = vst.msk [vmem:[#allocation2 + $0x139] sm:$0xff] %vm209_vm0, %v279_v53  ;;  %v481_v55 = vrot.slane %v332_v31, 1  ;;  %313 = vst.msk [vmem:[#allocation2 + $0x141] sm:$0xff] %vm209_vm0, %v280_v54 }
  0x2c   : > { %595 = vrot.lane.b32.xlu0 %v390_v40, %s1291_s9  ;;  %v1486_v56 = vld [vmem:[#allocation2 + $0x91] ss:$2 sm:$0xff]  ;;  %v482_v57 = vrot.slane %v334_v52, 1  ;;  %v1490_v58 = vsel %vm437_vm3, %v444_v50, %v445_v51  ;;  %v1492_v59 = vld [vmem:[#allocation2 + $0x90] ss:$2 sm:$0xff]  ;;  %v283_v61 = vld [vmem:[%s1398_s5 + $0xe0] sm:$0xff] }
  0x2d   : > { %v346_v60 = vld [vmem:[#allocation2 + $0xa0] ss:$2 sm:$0x1]  ;;  %v284_v62 = vld [vmem:[%s1398_s5 + $0xe8] sm:$0xff]  ;;  %316 = vst.msk [vmem:[#allocation2 + $0x169] sm:$0xff] %vm209_vm0, %v283_v61  ;;  %v447_v0 = vrot.slane %v1492_v59, 1 }
  0x2e   : > { %v483_v63 = vsel %vm437_vm3, %v481_v55, %v482_v57  ;;  %v448_v1 = vrot.slane %v346_v60, 1  ;;  %317 = vst.msk [vmem:[#allocation2 + $0x171] sm:$0xff] %vm209_vm0, %v284_v62  ;;  %v285_v2 = vld [vmem:[%s1398_s5 + $0xf0] sm:$0xff]  ;;  %v286_v4 = vld [vmem:[%s1398_s5 + $0xf8] sm:$0xff]  ;;  %v787_v6 = vld [vmem:[%s1787_s1] sm:$0xff] }
  0x2f   : > { %541 = vrot.lane.b32.xlu1 %v1469_v43, %s1289_s7  ;;  %318 = vst.msk [vmem:[#allocation2 + $0x181] sm:$0xff] %vm209_vm0, %v285_v2  ;;  %v340_v5 = vld [vmem:[#allocation2 + $0x78] ss:$2 sm:$0xff]  ;;  %319 = vst.msk [vmem:[#allocation2 + $0x189] sm:$0xff] %vm209_vm0, %v286_v4  ;;  %v788_v8 = vld [vmem:[%s1787_s1 + $0x8] sm:$0xff] }
  0x30   : > { %597 = vrot.lane.b32.xlu0 %v394_v47, %s1291_s9  ;;  %v1510_v3 = vsel %vm437_vm3, %v447_v0, %v448_v1  ;;  %v1161_v9 = vpack.c.bf16 %v788_v8, %v787_v6  ;;  %v789_v10 = vld [vmem:[%s1787_s1 + $0x10] sm:$0xff]  ;;  %v790_v11 = vld [vmem:[%s1787_s1 + $0x18] sm:$0xff]  ;;  %v791_v15 = vld [vmem:[%s1787_s1 + $0x20] sm:$0xf]  ;;  %v484_v17 = vrot.slane %v340_v5, 1 }
  0x31   : > { %v1165_v12 = vpack.c.bf16 %v790_v11, %v789_v10  ;;  %v348_v13 = vld [vmem:[#allocation2 + $0xa8] ss:$2 sm:$0xff]  ;;  %v398_v14 = vld [vmem:[#allocation2 + $0x79] ss:$2 sm:$0xff]  ;;  %v402_v20 = vld [vmem:[#allocation2 + $0xa9] ss:$2 sm:$0xff] }
  0x32   : > { %1162 = vmatprep.subr.bf16.mxu0 %v1161_v9  ;;  %1169 = vmatprep.subr.bf16.mxu1 %v1161_v9  ;;  %v342_v16 = vld [vmem:[#allocation2 + $0x88] ss:$2 sm:$0x1]  ;;  %v404_v18 = vld [vmem:[#allocation2 + $0xc1] ss:$2 sm:$0xff]  ;;  %v487_v27 = vrot.slane %v348_v13, 1 }
  0x33   : > { %619 = vrot.lane.b32.xlu1 %v480_v49, %s1292_s10  ;;  %1164 = vmatpush3.bf16.msra.mxu0 %v1161_v9  ;;  %v485_v19 = vrot.slane %v342_v16, 1  ;;  %v1542_v21 = vld [vmem:[#allocation2 + $0xc0] ss:$2 sm:$0xff]  ;;  %v354_v22 = vld [vmem:[#allocation2 + $0xd0] ss:$2 sm:$0x1] }
  0x34   : > { %521 = vrot.lane.b32.xlu0 %v1486_v56, %s1288_s6  ;;  %1172 = vmatpush3.bf16.msra.mxu1 %v1161_v9  ;;  %v450_v24 = vrot.slane %v1542_v21, 1  ;;  %v451_v25 = vrot.slane %v354_v22, 1  ;;  %v350_v26 = vld [vmem:[#allocation2 + $0xb8] ss:$2 sm:$0x1] }
  0x35   : > { %1166 = vmatprep.subr.bf16.mxu0 %v1165_v12  ;;  %1170 = vmatprep.subr.bf16.mxu1 %v1165_v12  ;;  %v486_v23 = vsel %vm437_vm3, %v484_v17, %v485_v19  ;;  %v488_v30 = vrot.slane %v350_v26, 1  ;;  %v1552_v32 = vld [vmem:[#allocation2 + $0xf0] ss:$2 sm:$0xff]  ;;  %v362_v33 = vld [vmem:[#allocation2 + $0x100] ss:$2 sm:$0x1] }
  0x36   : > { %v452_v31 = vsel %vm437_vm3, %v450_v24, %v451_v25  ;;  %v453_v35 = vrot.slane %v1552_v32, 1  ;;  %v454_v36 = vrot.slane %v362_v33, 1  ;;  %v356_v38 = vld [vmem:[#allocation2 + $0xd8] ss:$2 sm:$0xff]  ;;  %v364_v39 = vld [vmem:[#allocation2 + $0x108] ss:$2 sm:$0xff] }
  0x37   : > { %543 = vrot.lane.b32.xlu1 %v1490_v58, %s1289_s7  ;;  %1168 = vmatpush3.bf16.msra.mxu0 %v1165_v12  ;;  %v406_v40 = vld [vmem:[#allocation2 + $0xd9] ss:$2 sm:$0xff]  ;;  %v358_v41 = vld [vmem:[#allocation2 + $0xe8] ss:$2 sm:$0x1]  ;;  %v490_v42 = vrot.slane %v356_v38, 1 }
  0x38   : > { %621 = vrot.lane.b32.xlu0 %v483_v63, %s1292_s10  ;;  %1173 = vmatpush3.bf16.msra.mxu1 %v1165_v12  ;;  %v455_v37 = vsel %vm437_vm3, %v453_v35, %v454_v36  ;;  %v491_v44 = vrot.slane %v358_v41, 1  ;;  %v410_v46 = vld [vmem:[#allocation2 + $0x109] ss:$2 sm:$0xff]  ;;  %v1573_v47 = vld [vmem:[#allocation2 + $0x120] ss:$2 sm:$0xff]  ;;  %v493_v53 = vrot.slane %v364_v39, 1 }
  0x39   : > { %1147 = vmatprep.subr.msk.mxu0 %vm824_vm4, %v791_v15  ;;  %1171 = vmatprep.subr.msk.mxu1 %vm824_vm4, %v791_v15  ;;  %v370_v48 = vld [vmem:[#allocation2 + $0x130] ss:$2 sm:$0x1]  ;;  %v456_v50 = vrot.slane %v1573_v47, 1  ;;  %v416_v54 = vld [vmem:[#allocation2 + $0x151] ss:$2 sm:$0xff] }
  0x3a   : > { %v492_v49 = vsel %vm437_vm3, %v490_v42, %v491_v44  ;;  %v457_v51 = vrot.slane %v370_v48, 1  ;;  %v366_v52 = vld [vmem:[#allocation2 + $0x118] ss:$2 sm:$0x1]  ;;  %v380_v1 = vld [vmem:[#allocation2 + $0x168] ss:$2 sm:$0xff] }
  0x3b   : > { %643 = vrot.lane.b32.xlu1 %v1447_v29, %s1293_s11  ;;  %1148 = vmatpush3.msk.msra.mxu0 %vm824_vm4, %v791_v15  ;;  %v494_v55 = vrot.slane %v366_v52, 1  ;;  %v1582_v57 = vld [vmem:[#allocation2 + $0x150] ss:$2 sm:$0xff]  ;;  %v414_v2 = vld [vmem:[#allocation2 + $0x139] ss:$2 sm:$0xff]  ;;  %v499_v9 = vrot.slane %v380_v1, 1 }
  0x3c   : > { %545 = vrot.lane.b32.xlu0 %v1510_v3, %s1289_s7  ;;  %1174 = vmatpush3.msk.msra.mxu1 %vm824_vm4, %v791_v15  ;;  %v459_v61 = vrot.slane %v1582_v57, 1  ;;  %v372_v0 = vld [vmem:[#allocation2 + $0x138] ss:$2 sm:$0xff]  ;;  %v418_v8 = vld [vmem:[#allocation2 + $0x169] ss:$2 sm:$0xff] }
  0x3d   : > { %v495_v60 = vsel %vm437_vm3, %v493_v53, %v494_v55  ;;  %v496_v4 = vrot.slane %v372_v0, 1  ;;  %v382_v6 = vld [vmem:[#allocation2 + $0x178] ss:$2 sm:$0x1]  ;;  %v420_v19 = vld [vmem:[#allocation2 + $0x181] ss:$2 sm:$0xff] }
  0x3e   : > { %v500_v11 = vrot.slane %v382_v6, 1  ;;  %v386_v16 = vld [vmem:[#allocation2 + $0x190] ss:$2 sm:$0x1] }
  0x3f   : > { %567 = vrot.lane.b32.xlu1 %v340_v5, %s1290_s8 }
  0x40   : > { %645 = vrot.lane.b32.xlu0 %v1472_v45, %s1293_s11  ;;  %v501_v12 = vsel %vm437_vm3, %v499_v9, %v500_v11 }
  0x43   : > { %668 = vrot.lane.b32.xlu1 %v1445_v28, %s1294_s30  ;;  %v408_v28 = vld [vmem:[#allocation2 + $0xf1] ss:$2 sm:$0xff] }
  0x44   : > { %569 = vrot.lane.b32.xlu0 %v348_v13, %s1290_s8 }
  0x47   : > { %599 = vrot.lane.b32.xlu1 %v398_v14, %s1291_s9  ;;  %v384_v14 = vld [vmem:[#allocation2 + $0x180] ss:$2 sm:$0xff] }
  0x48   : > { %670 = vrot.lane.b32.xlu0 %v1457_v34, %s1294_s30  ;;  %v489_v34 = vsel %vm437_vm3, %v487_v27, %v488_v30 }
  0x4b   : > { %692 = vrot.lane.b32.xlu1 %v1469_v43, %s1295_s13  ;;  %v412_v43 = vld [vmem:[#allocation2 + $0x121] ss:$2 sm:$0xff] }
  0x4c   : > { %523 = vrot.lane.b32.xlu0 %v404_v18, %s1288_s6 }
  0x4f   : > { %601 = vrot.lane.b32.xlu1 %v402_v20, %s1291_s9  ;;  %v505_v20 = vrot.slane %v386_v16, 1 }
  0x50   : > { %623 = vrot.lane.b32.xlu0 %v486_v23, %s1292_s10 }
  0x53   : > { %694 = vrot.lane.b32.xlu1 %v1490_v58, %s1295_s13  ;;  %v378_v58 = vld [vmem:[#allocation2 + $0x160] ss:$2 sm:$0x1] }
  0x54   : > { %525 = vrot.lane.b32.xlu0 %v408_v28, %s1288_s6  ;;  %v460_v62 = vrot.slane %v378_v58, 1 }
  0x56   : > { %v461_v63 = vsel %vm437_vm3, %v459_v61, %v460_v62 }
  0x57   : > { %547 = vrot.lane.b32.xlu1 %v452_v31, %s1289_s7 }
  0x58   : > { %625 = vrot.lane.b32.xlu0 %v489_v34, %s1292_s10 }
  0x5b   : > { %647 = vrot.lane.b32.xlu1 %v1492_v59, %s1293_s11 }
  0x5c   : > { %549 = vrot.lane.b32.xlu0 %v455_v37, %s1289_s7 }
  0x5f   : > { %571 = vrot.lane.b32.xlu1 %v356_v38, %s1290_s8 }
  0x60   : > { %649 = vrot.lane.b32.xlu0 %v1542_v21, %s1293_s11 }
  0x63   : > { %672 = vrot.lane.b32.xlu1 %v1486_v56, %s1294_s30  ;;  %v458_v56 = vsel %vm437_vm3, %v456_v50, %v457_v51 }
  0x64   : > { %573 = vrot.lane.b32.xlu0 %v364_v39, %s1290_s8 }
  0x67   : > { %603 = vrot.lane.b32.xlu1 %v406_v40, %s1291_s9 }
  0x68   : > { %674 = vrot.lane.b32.xlu0 %v404_v18, %s1294_s30  ;;  %v504_v18 = vrot.slane %v384_v14, 1 }
  0x6a   : > { %v506_v24 = vsel %vm437_vm3, %v504_v18, %v505_v20 }
  0x6b   : > { %696 = vrot.lane.b32.xlu1 %v1510_v3, %s1295_s13  ;;  %v374_v3 = vld [vmem:[#allocation2 + $0x148] ss:$2 sm:$0x1] }
  0x6c   : > { %527 = vrot.lane.b32.xlu0 %v412_v43, %s1288_s6  ;;  %v497_v5 = vrot.slane %v374_v3, 1 }
  0x6e   : > { %v498_v10 = vsel %vm437_vm3, %v496_v4, %v497_v5 }
  0x6f   : > { %605 = vrot.lane.b32.xlu1 %v410_v46, %s1291_s9 }
  0x70   : > { %627 = vrot.lane.b32.xlu0 %v492_v49, %s1292_s10 }
  0x73   : > { %698 = vrot.lane.b32.xlu1 %v452_v31, %s1295_s13 }
  0x74   : > { %529 = vrot.lane.b32.xlu0 %v416_v54, %s1288_s6  ;;  %s1125_s6 = sshll.u32 %s1392_s27, 6  ;;  %s196_s27 = sand.u32 1, %s1277_s16  }
  0x75   : > { %s1105_s14 = sshll.u32 %s196_s27, 1  ;;  %s1001_s5 = scalar_lea.sflag [#allocation4], %s196_s27 }
  0x76   : > { %s198_s22 = scalar_lea.vmem [#allocation3], %s1105_s14 }
  0x77   : > { %551 = vrot.lane.b32.xlu1 %v458_v56, %s1289_s7  ;;  %s1017_s23 = sshll.u32 %s198_s22, 4  ;;  %s1746_s23 = int_to_ptr.vmem [resolvable:$true] %s1017_s23 }
  0x78   : > { %629 = vrot.lane.b32.xlu0 %v495_v60, %s1292_s10  ;;  %s1223_s19 = scalar_lea.vmem %s1746_s23, 32 }
  0x79   : > { %p1224_p11 = scmp.ne.s32.totalorder %s1746_s23, %s1223_s19 }
  0x7b   : > { %651 = vrot.lane.b32.xlu1 %v1552_v32, %s1293_s11  ;;  %p1225_p12 = pnand %p1224_p11, %p1360_p5 }
  0x7c   : > { %553 = vrot.lane.b32.xlu0 %v461_v63, %s1289_s7 }
  0x7d   : > { %p1226_p13 = pneg %p1225_p12 }
  0x7f   : > { %575 = vrot.lane.b32.xlu1 %v372_v0, %s1290_s8 }
  0x80   : > { %653 = vrot.lane.b32.xlu0 %v1573_v47, %s1293_s11 }
  0x83   : > { %676 = vrot.lane.b32.xlu1 %v408_v28, %s1294_s30 }
  0x84   : > { %577 = vrot.lane.b32.xlu0 %v380_v1, %s1290_s8 }
  0x87   : > { %607 = vrot.lane.b32.xlu1 %v414_v2, %s1291_s9 }
  0x88   : > { %678 = vrot.lane.b32.xlu0 %v412_v43, %s1294_s30 }
  0x89   : > { %v516_v13 = vpop.permute.xlu0 %515 }
  0x8a   : > { %v716_v39 = vsel %vm209_vm0, %v1408_v7, %v516_v13 }
  0x8b   : > { %700 = vrot.lane.b32.xlu1 %v455_v37, %s1295_s13 }
  0x8c   : > { %609 = vrot.lane.b32.xlu0 %v418_v8, %s1291_s9 }
  0x8f   : > { %631 = vrot.lane.b32.xlu1 %v498_v10, %s1292_s10 }
  0x90   : > { %702 = vrot.lane.b32.xlu0 %v458_v56, %s1295_s13 }
  0x93   : > { %633 = vrot.lane.b32.xlu1 %v501_v12, %s1292_s10 }
  0x94   : > { %655 = vrot.lane.b32.xlu0 %v1582_v57, %s1293_s11 }
  0x95   : > { %v540_v15 = vpop.permute.xlu1 %539 }
  0x96   : > { %v518_v17 = vpop.permute.xlu0 %517  ;;  %v725_v41 = vsel %vm724_vm5, %v716_v39, %v540_v15 }
  0x97   : > { %657 = vrot.lane.b32.xlu1 %v384_v14, %s1293_s11  ;;  %v717_v48 = vsel %vm209_vm0, %v1447_v29, %v518_v17  ;;  %s1705_s11 = scalar_lea.vmem %s1789_s3, %s1125_s6 }
  0x98   : > { %680 = vrot.lane.b32.xlu0 %v416_v54, %s1294_s30 }
  0x99   : > { %v566_v22 = vpop.permute.xlu1 %565 }
  0x9a   : > { %v564_v23 = vpop.permute.xlu0 %563 }
  0x9b   : > { %682 = vrot.lane.b32.xlu1 %v420_v19, %s1294_s30  ;;  %v734_v43 = vsel %vm733_vm6, %v725_v41, %v564_v23  ;;  %s1744_s30 = scalar_lea.hbm %s1790_s4, %s1121_s20 }
  0x9c   : > { %704 = vrot.lane.b32.xlu0 %v461_v63, %s1295_s13 }
  0x9d   : > { %v520_v25 = vpop.permute.xlu1 %519 }
  0x9e   : > { %v596_v26 = vpop.permute.xlu0 %595  ;;  %v718_v11 = vsel %vm209_vm0, %v1472_v45, %v520_v25 }
  0x9f   : > { %706 = vrot.lane.b32.xlu1 %v506_v24, %s1295_s13  ;;  %v743_v46 = vsel %vm742_vm7, %v734_v43, %v596_v26  ;;  %s1227_s13 = sshll.u32 %s1296_s12, 4  ;;  %s1228_s13 = int_to_ptr.vmem [resolvable:$false] %s1227_s13 }
  0xa0   : > { %s1229_s6 = scalar_lea.vmem %s1228_s13, 64  ;;  %p1230_p0 = scmp.lt.s32.totalorder %s1746_s23, %s1228_s13 }
  0xa1   : > { %v542_v27 = vpop.permute.xlu1 %541  ;;  %p1231_p1 = scmp.lt.s32.totalorder %s1229_s6, %s1223_s19 }
  0xa2   : > { %v598_v28 = vpop.permute.xlu0 %597  ;;  %v726_v49 = vsel %vm724_vm5, %v717_v48, %v542_v27 }
  0xa3   : > { %v735_v55 = vsel %vm733_vm6, %v726_v49, %v566_v22  ;;  %p1232_p2 = por %p1231_p1, %p1230_p0 }
  0xa4   : > { %v744_v58 = vsel %vm742_vm7, %v735_v55, %v598_v28 }
  0xa5   : > { %v620_v30 = vpop.permute.xlu1 %619  ;;  %p1233_p3 = pnand %p1232_p2, %p1226_p13 }
  0xa6   : > { %v1615_v31 = vpop.permute.xlu0 %521  ;;  %v752_v7 = vsel %vm751_vm8, %v743_v46, %v620_v30 }
  0xa7   : > { %v719_v45 = vsel %vm209_vm0, %v1492_v59, %v1615_v31 }
  0xa9   : > { %v544_v33 = vpop.permute.xlu1 %543 }
  0xaa   : > { %v622_v34 = vpop.permute.xlu0 %621  ;;  %v727_v12 = vsel %vm724_vm5, %v718_v11, %v544_v33 }
  0xab   : > { %v753_v60 = vsel %vm751_vm8, %v744_v58, %v622_v34 }
  0xad   : > { %v644_v35 = vpop.permute.xlu1 %643 }
  0xae   : > { %v546_v36 = vpop.permute.xlu0 %545  ;;  %v761_v50 = vsel %vm760_vm9, %v752_v7, %v644_v35 }
  0xaf   : > { %v728_v24 = vsel %vm724_vm5, %v719_v45, %v546_v36 }
  0xb1   : > { %v568_v37 = vpop.permute.xlu1 %567 }
  0xb2   : > { %v646_v38 = vpop.permute.xlu0 %645  ;;  %v736_v14 = vsel %vm733_vm6, %v727_v12, %v568_v37 }
  0xb3   : > { %v762_v61 = vsel %vm760_vm9, %v753_v60, %v646_v38 }
  0xb5   : > { %v669_v40 = vpop.permute.xlu1 %668 }
  0xb6   : > { %v570_v42 = vpop.permute.xlu0 %569  ;;  %v770_v52 = vsel %vm769_vm10, %v761_v50, %v669_v40 }
  0xb7   : > { %v737_v26 = vsel %vm733_vm6, %v728_v24, %v570_v42 }
  0xb9   : > { %v600_v44 = vpop.permute.xlu1 %599 }
  0xba   : > { %v671_v51 = vpop.permute.xlu0 %670  ;;  %v745_v16 = vsel %vm742_vm7, %v736_v14, %v600_v44 }
  0xbb   : > { %v771_v63 = vsel %vm769_vm10, %v762_v61, %v671_v51 }
  0xbd   : > { %v693_v53 = vpop.permute.xlu1 %692 }
  0xbe   : > { %v779_v54 = vsel %vm778_vm11, %v770_v52, %v693_v53  ;;  %v524_v56 = vpop.permute.xlu0 %523 }
  0xbf   : > { %1149 = vmatprep.mubr.msk.f32.mxu0 %vm799_vm12, %v779_v54  ;;  %v720_v44 = vsel %vm209_vm0, %v1542_v21, %v524_v56 }
  0xc1   : > { %v602_v29 = vpop.permute.xlu1 %601 }
  0xc2   : > { %v624_v62 = vpop.permute.xlu0 %623  ;;  %v746_v28 = vsel %vm742_vm7, %v737_v26, %v602_v29 }
  0xc3   : > { %v754_v17 = vsel %vm751_vm8, %v745_v16, %v624_v62 }
  0xc5   : > { %v695_v0 = vpop.permute.xlu1 %694 }
  0xc6   : > { %v780_v1 = vsel %vm778_vm11, %v771_v63, %v695_v0  ;;  %v526_v2 = vpop.permute.xlu0 %525 }
  0xc7   : > { %1150 = vmatmul.mubr.msk.f32.vlgmr.msra.gmra.mrb[0].mxu0 %vm799_vm12, %v780_v1  ;;  %v721_v29 = vsel %vm209_vm0, %v1552_v32, %v526_v2 }
  0xc9   : > { %v548_v3 = vpop.permute.xlu1 %547 }
  0xca   : > { %v626_v4 = vpop.permute.xlu0 %625  ;;  %v729_v46 = vsel %vm724_vm5, %v720_v44, %v548_v3 }
  0xcb   : > { %v755_v30 = vsel %vm751_vm8, %v746_v28, %v626_v4 }
  0xcd   : > { %v648_v5 = vpop.permute.xlu1 %647 }
  0xce   : > { %v550_v6 = vpop.permute.xlu0 %549  ;;  %v763_v18 = vsel %vm760_vm9, %v754_v17, %v648_v5 }
  0xcf   : > { %v730_v56 = vsel %vm724_vm5, %v721_v29, %v550_v6 }
  0xd1   : > { %v572_v8 = vpop.permute.xlu1 %571 }
  0xd2   : > { %v650_v9 = vpop.permute.xlu0 %649  ;;  %v738_v7 = vsel %vm733_vm6, %v729_v46, %v572_v8 }
  0xd3   : > { %v764_v33 = vsel %vm760_vm9, %v755_v30, %v650_v9 }
  0xd5   : > { %v673_v10 = vpop.permute.xlu1 %672 }
  0xd6   : > { %v574_v13 = vpop.permute.xlu0 %573  ;;  %v772_v20 = vsel %vm769_vm10, %v763_v18, %v673_v10 }
  0xd7   : > { %v739_v58 = vsel %vm733_vm6, %v730_v56, %v574_v13 }
  0xd9   : > { %v604_v15 = vpop.permute.xlu1 %603 }
  0xda   : > { %v675_v19 = vpop.permute.xlu0 %674  ;;  %v747_v50 = vsel %vm742_vm7, %v738_v7, %v604_v15 }
  0xdb   : > { %v773_v35 = vsel %vm769_vm10, %v764_v33, %v675_v19 }
  0xdd   : > { %v697_v22 = vpop.permute.xlu1 %696 }
  0xde   : > { %v781_v23 = vsel %vm778_vm11, %v772_v20, %v697_v22  ;;  %v528_v25 = vpop.permute.xlu0 %527 }
  0xdf   : > { %1152 = vmatprep.mubr.msk.f32.mxu0 %vm799_vm12, %v781_v23  ;;  %v722_v6 = vsel %vm209_vm0, %v1573_v47, %v528_v25  ;;  %v1110_v25 = vld [vmem:[%s1788_s2] ss:$0 sm:$0xff] }
  0xe1   : > { %v606_v27 = vpop.permute.xlu1 %605 }
  0xe2   : > { %v628_v34 = vpop.permute.xlu0 %627  ;;  %v748_v61 = vsel %vm742_vm7, %v739_v58, %v606_v27 }
  0xe3   : > { %v756_v51 = vsel %vm751_vm8, %v747_v50, %v628_v34 }
  0xe5   : > { %v699_v37 = vpop.permute.xlu1 %698 }
  0xe6   : > { %v782_v59 = vsel %vm778_vm11, %v773_v35, %v699_v37  ;;  %v530_v31 = vpop.permute.xlu0 %529 }
  0xe7   : > { %1153 = vmatmul.mubr.msk.f32.gmra.mrb[2].mxu0 %vm799_vm12, %v782_v59  ;;  %v723_v8 = vsel %vm209_vm0, %v1582_v57, %v530_v31 }
  0xe9   : > { %v552_v36 = vpop.permute.xlu1 %551 }
  0xea   : > { %v630_v38 = vpop.permute.xlu0 %629  ;;  %v731_v9 = vsel %vm724_vm5, %v722_v6, %v552_v36 }
  0xeb   : > { %v757_v63 = vsel %vm751_vm8, %v748_v61, %v630_v38 }
  0xed   : > { %v652_v39 = vpop.permute.xlu1 %651 }
  0xee   : > { %v554_v40 = vpop.permute.xlu0 %553  ;;  %v765_v52 = vsel %vm760_vm9, %v756_v51, %v652_v39 }
  0xef   : > { %v732_v10 = vsel %vm724_vm5, %v723_v8, %v554_v40 }
  0xf1   : > { %v576_v41 = vpop.permute.xlu1 %575 }
  0xf2   : > { %v654_v42 = vpop.permute.xlu0 %653  ;;  %v740_v11 = vsel %vm733_vm6, %v731_v9, %v576_v41 }
  0xf3   : > { %v766_v0 = vsel %vm760_vm9, %v757_v63, %v654_v42 }
  0xf5   : > { %v677_v43 = vpop.permute.xlu1 %676 }
  0xf6   : > { %v578_v48 = vpop.permute.xlu0 %577  ;;  %v774_v54 = vsel %vm769_vm10, %v765_v52, %v677_v43 }
  0xf7   : > { %v741_v13 = vsel %vm733_vm6, %v732_v10, %v578_v48 }
  0xf9   : > { %v608_v49 = vpop.permute.xlu1 %607 }
  0xfa   : > { %v679_v53 = vpop.permute.xlu0 %678  ;;  %v749_v14 = vsel %vm742_vm7, %v740_v11, %v608_v49 }
  0xfb   : > { %v775_v1 = vsel %vm769_vm10, %v766_v0, %v679_v53 }
  0xfd   : > { %v701_v55 = vpop.permute.xlu1 %700 }
  0xfe   : > { %v783_v21 = vsel %vm778_vm11, %v774_v54, %v701_v55  ;;  %v610_v60 = vpop.permute.xlu0 %609 }
  0xff   : > { %1155 = vmatprep.mubr.msk.f32.mxu1 %vm799_vm12, %v783_v21  ;;  %v750_v16 = vsel %vm742_vm7, %v741_v13, %v610_v60 }
 0x101   : > { %v632_v62 = vpop.permute.xlu1 %631 }
 0x102   : > { %v703_v3 = vpop.permute.xlu0 %702  ;;  %v758_v47 = vsel %vm751_vm8, %v749_v14, %v632_v62 }
 0x103   : > { %v784_v32 = vsel %vm778_vm11, %v775_v1, %v703_v3 }
 0x104   : > { %1156 = vmatmul.mubr.msk.f32.vlgmr.msra.gmra.mrb[0].mxu1 %vm799_vm12, %v784_v32 }
 0x105   : > { %v634_v2 = vpop.permute.xlu1 %633 }
 0x106   : > { %v656_v4 = vpop.permute.xlu0 %655  ;;  %v759_v17 = vsel %vm751_vm8, %v750_v16, %v634_v2 }
 0x107   : > { %v767_v57 = vsel %vm760_vm9, %v758_v47, %v656_v4 }
 0x109   : > { %v658_v5 = vpop.permute.xlu1 %657 }
 0x10a   : > { %v681_v12 = vpop.permute.xlu0 %680  ;;  %v768_v18 = vsel %vm760_vm9, %v759_v17, %v658_v5 }
 0x10b   : > { %v776_v19 = vsel %vm769_vm10, %v767_v57, %v681_v12 }
 0x10d   : > { %v683_v15 = vpop.permute.xlu1 %682 }
 0x10e   : > { %v705_v20 = vpop.permute.xlu0 %704  ;;  %v777_v22 = vsel %vm769_vm10, %v768_v18, %v683_v15 }
 0x10f   : > { %v785_v23 = vsel %vm778_vm11, %v776_v19, %v705_v20 }
 0x110   : > { %1158 = vmatprep.mubr.msk.f32.mxu1 %vm799_vm12, %v785_v23 }
 0x111   : > { %v707_v45 = vpop.permute.xlu1 %706 }
 0x112   : > { %v786_v24 = vsel %vm778_vm11, %v777_v22, %v707_v45 }
 0x113   : > { %1159 = vmatmul.mubr.msk.f32.gmra.mrb[2].mxu1 %vm799_vm12, %v786_v24 }
 0x19a   : > { %v1151_v26 = vpop.f32.mrb[0].mxu0 }
 0x19b   : > { %v900_v27 = vadd.f32 %v1151_v26, %v1110_v25  ;;  %v894_v28 = vpop.f32.mrb[1].mxu0 }
 0x19c   : > { %v895_v30 = vadd.f32 %v1110_v25, %v894_v28 }
 0x19d   : > { %934 = vst.msk [vmem:[%s1705_s11 + $0x8] sm:$0xff] %vm724_vm5, %v900_v27  ;;  %v942_v33 = vsel %vm724_vm5, %v900_v27, 0.0  ;;  %v963_v34 = vmul.f32 %v900_v27, %v900_v27 }
 0x19e   : > { %933 = vst.msk [vmem:[%s1705_s11] sm:$0xff] %vm724_vm5, %v895_v30  ;;  %v941_v35 = vsel %vm724_vm5, %v895_v30, 0.0  ;;  %v962_v37 = vmul.f32 %v895_v30, %v895_v30 }
 0x19f   : > { %v971_v59 = vsel %vm724_vm5, %v963_v34, 0.0  ;;  %v943_v31 = vadd.f32 %v942_v33, %v941_v35 }
 0x1a0   : > { %v970_v36 = vsel %vm724_vm5, %v962_v37, 0.0 }
 0x1a1   : > { %v972_v38 = vadd.f32 %v971_v59, %v970_v36 }
 0x1ba   : > { %v1154_v39 = vpop.f32.mrb[2].mxu0 }
 0x1bb   : > { %v910_v40 = vadd.f32 %v1154_v39, %v1110_v25  ;;  %v904_v41 = vpop.f32.mrb[3].mxu0 }
 0x1bc   : > { %v905_v42 = vadd.f32 %v1110_v25, %v904_v41 }
 0x1bd   : > { %936 = vst.msk [vmem:[%s1705_s11 + $0x18] sm:$0xff] %vm724_vm5, %v910_v40  ;;  %v965_v43 = vmul.f32 %v910_v40, %v910_v40  ;;  %v946_v7 = vsel %vm724_vm5, %v910_v40, 0.0 }
 0x1be   : > { %935 = vst.msk [vmem:[%s1705_s11 + $0x10] sm:$0xff] %vm724_vm5, %v905_v42  ;;  %v944_v44 = vsel %vm724_vm5, %v905_v42, 0.0  ;;  %v964_v46 = vmul.f32 %v905_v42, %v905_v42 }
 0x1bf   : > { %v945_v48 = vadd.f32 %v944_v44, %v943_v31  ;;  %v975_v52 = vsel %vm724_vm5, %v965_v43, 0.0 }
 0x1c0   : > { %v973_v49 = vsel %vm724_vm5, %v964_v46, 0.0 }
 0x1c1   : > { %v974_v50 = vadd.f32 %v973_v49, %v972_v38  ;;  %v947_v51 = vadd.f32 %v946_v7, %v945_v48 }
 0x1c3   : > { %v976_v53 = vadd.f32 %v975_v52, %v974_v50 }
 0x1d7   : > { %v1157_v54 = vpop.f32.mrb[0].mxu1 }
 0x1d8   : > { %v920_v55 = vadd.f32 %v1157_v54, %v1110_v25  ;;  %v914_v29 = vpop.f32.mrb[1].mxu1 }
 0x1d9   : > { %v915_v21 = vadd.f32 %v1110_v25, %v914_v29 }
 0x1da   : > { %938 = vst.msk [vmem:[%s1705_s11 + $0x28] sm:$0xff] %vm724_vm5, %v920_v55  ;;  %v967_v56 = vmul.f32 %v920_v55, %v920_v55  ;;  %v950_v62 = vsel %vm724_vm5, %v920_v55, 0.0 }
 0x1db   : > { %937 = vst.msk [vmem:[%s1705_s11 + $0x20] sm:$0xff] %vm724_vm5, %v915_v21  ;;  %v948_v58 = vsel %vm724_vm5, %v915_v21, 0.0  ;;  %v966_v60 = vmul.f32 %v915_v21, %v915_v21 }
 0x1dc   : > { %v949_v61 = vadd.f32 %v948_v58, %v947_v51  ;;  %v979_v3 = vsel %vm724_vm5, %v967_v56, 0.0 }
 0x1dd   : > { %v977_v63 = vsel %vm724_vm5, %v966_v60, 0.0 }
 0x1de   : > { %v978_v0 = vadd.f32 %v977_v63, %v976_v53  ;;  %v951_v1 = vadd.f32 %v950_v62, %v949_v61 }
 0x1e0   : > { %v980_v32 = vadd.f32 %v979_v3, %v978_v0 }
 0x1e6   : > { %v1160_v2 = vpop.f32.mrb[2].mxu1 }
 0x1e7   : > { %v930_v4 = vadd.f32 %v1160_v2, %v1110_v25  ;;  %v924_v5 = vpop.f32.mrb[3].mxu1 }
 0x1e8   : > { %v925_v6 = vadd.f32 %v1110_v25, %v924_v5 }
 0x1e9   : > { %940 = vst.msk [vmem:[%s1705_s11 + $0x38] sm:$0xff] %vm724_vm5, %v930_v4  ;;  %v969_v8 = vmul.f32 %v930_v4, %v930_v4  ;;  %v954_v12 = vsel %vm724_vm5, %v930_v4, 0.0 }
 0x1ea   : > { %939 = vst.msk [vmem:[%s1705_s11 + $0x30] sm:$0xff] %vm724_vm5, %v925_v6  ;;  %v952_v9 = vsel %vm724_vm5, %v925_v6, 0.0  ;;  %v968_v10 = vmul.f32 %v925_v6, %v925_v6 }
 0x1eb   : > { %v953_v11 = vadd.f32 %v952_v9, %v951_v1  ;;  %v983_v16 = vsel %vm724_vm5, %v969_v8, 0.0 }
 0x1ec   : > { %v981_v13 = vsel %vm724_vm5, %v968_v10, 0.0 }
 0x1ed   : > { %v955_v14 = vadd.f32 %v954_v12, %v953_v11  ;;  %v982_v15 = vadd.f32 %v981_v13, %v980_v32 }
 0x1ef   : > { %v956_v47 = vrot.slane %v955_v14, 4  ;;  %v984_v17 = vadd.f32 %v983_v16, %v982_v15 }
 0x1f1   : > { %v957_v57 = vadd.f32 %v956_v47, %v955_v14  ;;  %v985_v18 = vrot.slane %v984_v17, 4 }
 0x1f3   : > { %v958_v19 = vrot.slane %v957_v57, 2  ;;  %v986_v20 = vadd.f32 %v985_v18, %v984_v17 }
 0x1f5   : > { %v959_v22 = vadd.f32 %v958_v19, %v957_v57  ;;  %v987_v23 = vrot.slane %v986_v20, 2 }
 0x1f7   : > { %v960_v45 = vrot.slane %v959_v22, 1  ;;  %v988_v24 = vadd.f32 %v987_v23, %v986_v20 }
 0x1f9   : > { %v989_v25 = vrot.slane %v988_v24, 1  ;;  %v961_v26 = vadd.f32 %v960_v45, %v959_v22 }
 0x1fb   : > { %v990_v27 = vadd.f32 %v989_v25, %v988_v24 }
 0x1fd   : > { %v992_v28 = vsel %vm991_vm13, %v961_v26, %v990_v27 }
 0x1fe   : > { %994 = vst.msk [vmem:[%s198_s22] sm:$0x3] %vm993_vm14, %v992_v28 }
 0x1ff   : > { %1236 = shalt.err (!%p1233_p3)
}
 0x200   : > { %s1237_s7 = scalar_lea.hbm %s1744_s30, 32  ;;  %s1241_s10 = scalar_lea.hbm %s1790_s4, 64 }
 0x201   : > { %p1238_p4 = scmp.ne.s32.totalorder %s1744_s30, %s1237_s7  ;;  %p1242_p9 = scmp.lt.u32.totalorder %s1744_s30, %s1790_s4 }
 0x202   : > { %p1243_p10 = scmp.lt.u32.totalorder %s1241_s10, %s1237_s7  ;;  %p1245_p12 = scmp.lt.u32.totalorder %s1237_s7, %s1744_s30 }
 0x203   : > { %p1239_p7 = pnand %p1238_p4, %p1360_p5 }
 0x204   : > { %p1244_p11 = por %p1243_p10, %p1242_p9 }
 0x205   : > { %p1240_p8 = pneg %p1239_p7 }
 0x206   : > { %p1246_p13 = por %p1245_p12, %p1244_p11 }
 0x208   : > { %p1247_p0 = pnand %p1246_p13, %p1240_p8 }
 0x20a   : > { %1250 = shalt.err (!%p1247_p0)
}
 0x20b   : > { %1175 = dma.vmem_to_hbm [thread:$0]  (%p1360_p5), %s1746_s23, 32, %s1744_s30, %s1001_s5  }
 0x20c PF: > { %p1181_p1 = scmp.ge.s32.totalorder %s1285_s18, 2  ;;  %s1037_s14 = sand.u32 1, %s1273_s15  }
 0x20d   : > { %s1038_s20 = scalar_lea.sflag [#allocation4], %s1037_s14 }
 0x20e   : > { %p1178_p2 = pnand %p1181_p1, %p1364_p6 }
 0x210   : > { %1268 = dma.done.wait (!%p1178_p2), %s1038_s20, 32  }
 0x211   : > { %1270 = vsyncadd (!%p1178_p2), %s1038_s20, 4294967264  ;;  %p15_p3 = scmp.ge.s32.totalorder %s1347_s21, 4   ;;  %s1793_s15 = smov %s1277_s16 }
 0x212   : > { %s1794_s16 = smov %s1281_s17  ;;  %s1795_s17 = smov %s1358_s24 }
 0x213   : > { %s1796_s18 = smov %s1347_s21  ;;  %17 = sbr.rel (!%p15_p3) target bundleno = 3 (0x3), region = 131 }
 0x21a   :  { %1043 = vsyncpa [#allocation4], 1 }
 0x21b   :  { %1045 = vsyncpa [#allocation4 + $0x1], 1 }

</bundles_post_ra>
